<compile_context>
chip_gen: v7x
topology: tpu7x:2x2x1
jax: 0.10.0
libtpu: 0.0.40
codegen_flags: <defaults>
</compile_context>

<pallas_src>
import functools

import jax
import jax.numpy as jnp
from jax.experimental import pallas as pl
from jax.experimental.pallas import tpu as pltpu


def _round_up(x: int, m: int) -> int:
    return ((x + m - 1) // m) * m


def _split_balanced(dim: int, align: int, cap: int):
    """Split `dim` (> cap) into equal tiles, each a multiple of `align`."""
    padded = _round_up(dim, align)
    ntiles = -(-padded // cap)
    tile = _round_up(-(-padded // ntiles), align)
    return tile, tile * ntiles


def _linear_kernel_onepass(x_ref, w_ref, b_ref, o_ref, *, compute_dtype):
    # Single K step: no accumulator needed — write the finished tile directly.
    # x_ref: (tm, K)  w_ref: (K, tn)  b_ref: (1, tn)  o_ref: (tm, tn)
    acc = jnp.dot(
        x_ref[...].astype(compute_dtype),
        w_ref[...].astype(compute_dtype),
        preferred_element_type=jnp.float32,
    )
    o_ref[...] = (acc + b_ref[...]).astype(o_ref.dtype)


def _linear_kernel_ksplit(x_ref, w_ref, b_ref, o_ref, acc_ref, *, compute_dtype):
    # x_ref: (tm, tk)  w_ref: (tk, tn)  b_ref: (1, tn)  o_ref/acc_ref: (tm, tn)
    k = pl.program_id(2)

    @pl.when(k == 0)
    def _():
        acc_ref[...] = jnp.zeros_like(acc_ref)

    acc_ref[...] += jnp.dot(
        x_ref[...].astype(compute_dtype),
        w_ref[...].astype(compute_dtype),
        preferred_element_type=jnp.float32,
    )

    @pl.when(k == pl.num_programs(2) - 1)
    def _():
        # Bias add + cast only in the epilogue: inner K loop stays pure MXU.
        o_ref[...] = (acc_ref[...] + b_ref[...]).astype(o_ref.dtype)


@functools.partial(jax.jit, static_argnames=("tm", "tn", "tk", "use_bf16"))
def linear_forward(x, weight, bias, *, tm=512, tn=512, tk=1024, use_bf16=False):
    """Pallas equivalent of nn.Linear(input_dim, output_dim) forward.

    Args:
      x:      (batch, input_dim)       float32
      weight: (output_dim, input_dim)  float32 (PyTorch convention)
      bias:   (output_dim,)            float32
      tm/tn/tk: tile caps (re-rounded to (8, 128) alignment internally)
      use_bf16: feed the MXU bf16 operands (f32 accumulation); changes numerics.
    Returns:
      (batch, output_dim) float32
    """
    batch, input_dim = x.shape
    output_dim, k_dim = weight.shape
    assert k_dim == input_dim
    assert bias.shape == (output_dim,)

    compute_dtype = jnp.bfloat16 if use_bf16 else x.dtype

    # Re-align caller-supplied caps so blocks always satisfy the (8,128) rule.
    tm_cap = _round_up(max(int(tm), 8), 8)
    tn_cap = _round_up(max(int(tn), 128), 128)
    tk_cap = _round_up(max(int(tk), 128), 128)

    # --- M (batch): full-dim block if it fits -> no row padding / no x copy.
    if batch <= tm_cap:
        tm_, m_pad = batch, batch
    else:
        tm_, m_pad = _split_balanced(batch, 8, tm_cap)

    # --- K (input_dim): full-dim block if it fits -> single K step, no K pad.
    if input_dim <= tk_cap:
        tk_, k_pad = input_dim, input_dim
    else:
        tk_, k_pad = _split_balanced(input_dim, 128, tk_cap)

    # --- N (output_dim): keep lane-dense (multiple of 128) output stores;
    #     tn = n_pad whenever it fits so each x block is DMA'd exactly once.
    n_aligned = _round_up(output_dim, 128)
    if n_aligned <= tn_cap:
        tn_, n_pad = n_aligned, n_aligned
    else:
        tn_, n_pad = _split_balanced(output_dim, 128, tn_cap)

    # One-time weight transpose to (K, N): the kernel then contracts the
    # sublane axis of w (plain NN matmul) instead of forcing a per-step
    # weight-tile transpose through the XLU.
    w_t = weight.T  # (input_dim, output_dim)

    # Thin pads only when a dim had to be aligned/split.
    if (m_pad, k_pad) != (batch, input_dim):
        x = jnp.pad(x, ((0, m_pad - batch), (0, k_pad - input_dim)))
    if (k_pad, n_pad) != (input_dim, output_dim):
        w_t = jnp.pad(w_t, ((0, k_pad - input_dim), (0, n_pad - output_dim)))
    bias2 = bias
    if n_pad != output_dim:
        bias2 = jnp.pad(bias2, ((0, n_pad - output_dim),))
    bias2 = bias2.reshape(1, n_pad)

    m_tiles, n_tiles, k_tiles = m_pad // tm_, n_pad // tn_, k_pad // tk_

    # Scoped-VMEM budget from the actual working set: 2x double-buffered
    # inputs + 2x output + accumulator, capped at v7x's 64 MiB physical VMEM
    # (v5e's scoped default of 16 MiB would otherwise reject large tiles).
    itemsize = 4
    work = 2 * (tm_ * tk_ + tk_ * tn_ + tn_) * itemsize + 2 * tm_ * tn_ * itemsize
    if k_tiles > 1:
        work += tm_ * tn_ * 4
    vmem_limit = int(min(64 << 20, max(32 << 20, 2 * work)))

    out_shape = jax.ShapeDtypeStruct((m_pad, n_pad), x.dtype)

    if k_tiles == 1:
        kernel = functools.partial(_linear_kernel_onepass, compute_dtype=compute_dtype)
        grid_spec = pltpu.PrefetchScalarGridSpec(
            num_scalar_prefetch=0,
            grid=(m_tiles, n_tiles),
            in_specs=[
                pl.BlockSpec((tm_, tk_), lambda i, j: (i, 0)),  # x
                pl.BlockSpec((tk_, tn_), lambda i, j: (0, j)),  # weight (K, N)
                pl.BlockSpec((1, tn_), lambda i, j: (0, j)),    # bias
            ],
            out_specs=pl.BlockSpec((tm_, tn_), lambda i, j: (i, j)),
        )
        semantics = ("parallel", "parallel")
    else:
        kernel = functools.partial(_linear_kernel_ksplit, compute_dtype=compute_dtype)
        grid_spec = pltpu.PrefetchScalarGridSpec(
            num_scalar_prefetch=0,
            grid=(m_tiles, n_tiles, k_tiles),
            in_specs=[
                pl.BlockSpec((tm_, tk_), lambda i, j, k: (i, k)),  # x
                pl.BlockSpec((tk_, tn_), lambda i, j, k: (k, j)),  # weight (K, N)
                pl.BlockSpec((1, tn_), lambda i, j, k: (0, j)),    # bias
            ],
            out_specs=pl.BlockSpec((tm_, tn_), lambda i, j, k: (i, j)),
            scratch_shapes=[pltpu.VMEM((tm_, tn_), jnp.float32)],
        )
        semantics = ("parallel", "parallel", "arbitrary")

    out_padded = pl.pallas_call(
        kernel,
        out_shape=out_shape,
        grid_spec=grid_spec,
        compiler_params=pltpu.CompilerParams(
            dimension_semantics=semantics,
            vmem_limit_bytes=vmem_limit,
        ),
    )(x, w_t, bias2)

    if (m_pad, n_pad) != (batch, output_dim):
        out_padded = out_padded[:batch, :output_dim]
    return out_padded


if __name__ == "__main__":
    key = jax.random.PRNGKey(0)
    k_x, k_w, k_b = jax.random.split(key, 3)

    batch = 8
    input_dim = 32
    output_dim = 8

    x = jax.random.normal(k_x, (batch, input_dim), dtype=jnp.float32)
    # Mimic nn.Linear's uniform(-1/sqrt(fan_in), 1/sqrt(fan_in)) init.
    bound = 1.0 / (input_dim ** 0.5)
    weight = jax.random.uniform(
        k_w, (output_dim, input_dim), minval=-bound, maxval=bound, dtype=jnp.float32
    )
    bias = jax.random.uniform(
        k_b, (output_dim,), minval=-bound, maxval=bound, dtype=jnp.float32
    )

    out = linear_forward(x, weight, bias)
    out = jax.block_until_ready(out)

    # Correctness check against plain-JAX reference (PyTorch forward semantics).
    ref = x @ weight.T + bias
    assert out.shape == (batch, output_dim)
    assert jnp.allclose(out, ref, atol=1e-5, rtol=1e-5)

    # Also exercise the K-split (accumulator) path with a larger hidden dim.
    k_x2, k_w2, k_b2 = jax.random.split(jax.random.PRNGKey(1), 3)
    x2 = jax.random.normal(k_x2, (24, 300), dtype=jnp.float32)
    w2 = jax.random.normal(k_w2, (5, 300), dtype=jnp.float32) * 0.05
    b2 = jax.random.normal(k_b2, (5,), dtype=jnp.float32) * 0.05
    out2 = jax.block_until_ready(linear_forward(x2, w2, b2, tk=128))
    ref2 = x2 @ w2.T + b2
    assert jnp.allclose(out2, ref2, atol=1e-4, rtol=1e-4)

    # TODO(synk): training loop / optimizer / get_parameters() are out of scope
    # for a forward-pass kernel.

    print("KERNEL_OK")
</pallas_src>

<mosaic_0001>
module attributes {stable_mosaic.version = 11 : i64} {
  func.func @_linear_kernel_onepass(%arg0: i32, %arg1: i32, %arg2: memref<8x32xf32, #tpu.memory_space<vmem>>, %arg3: memref<32x128xf32, #tpu.memory_space<vmem>>, %arg4: memref<1x128xf32, #tpu.memory_space<vmem>>, %arg5: memref<8x128xf32, #tpu.memory_space<vmem>>) attributes {dimension_semantics = [#tpu.dimension_semantics<parallel>, #tpu.dimension_semantics<parallel>], iteration_bounds = array<i64: 1, 1>, scalar_prefetch = 0 : i64, scratch_operands = 0 : i64, tpu.core_type = #tpu.core_type<tc>, window_params = [{transform_indices = @transform_0, window_bounds = array<i64: 8, 32>}, {transform_indices = @transform_1, window_bounds = array<i64: 32, 128>}, {transform_indices = @transform_2, window_bounds = array<i64: 1, 128>}, {transform_indices = @transform_3, window_bounds = array<i64: 8, 128>}]} {
    %c0 = arith.constant 0 : index
    %c0_0 = arith.constant 0 : index
    %0 = vector.load %arg2[%c0, %c0_0] : memref<8x32xf32, #tpu.memory_space<vmem>>, vector<8x32xf32>
    %c0_1 = arith.constant 0 : index
    %c0_2 = arith.constant 0 : index
    %1 = vector.load %arg3[%c0_1, %c0_2] : memref<32x128xf32, #tpu.memory_space<vmem>>, vector<32x128xf32>
    %cst = arith.constant dense<0.000000e+00> : vector<8x128xf32>
    %2 = tpu.matmul %0, %1, %cst {dimension_numbers = #tpu.dot_dimension_numbers<[1], [0], [0], [1], [0, 0, 1, 1], [], []>} : vector<8x32xf32>, vector<32x128xf32>, vector<8x128xf32> -> vector<8x128xf32>
    %c0_3 = arith.constant 0 : index
    %c0_4 = arith.constant 0 : index
    %3 = vector.load %arg4[%c0_3, %c0_4] : memref<1x128xf32, #tpu.memory_space<vmem>>, vector<1x128xf32>
    %4 = vector.broadcast %3 : vector<1x128xf32> to vector<8x128xf32>
    %5 = arith.addf %2, %4 : vector<8x128xf32>
    %c0_5 = arith.constant 0 : index
    %c0_6 = arith.constant 0 : index
    %6 = vector.load %arg5[%c0_5, %c0_6] : memref<8x128xf32, #tpu.memory_space<vmem>>, vector<8x128xf32>
    tpu.vector_store %arg5[%c0_5, %c0_6], %5 {strides = array<i32>} : memref<8x128xf32, #tpu.memory_space<vmem>>, vector<8x128xf32>,
    return
  }
  func.func @transform_0(%arg0: i32, %arg1: i32) -> (i32, i32) {
    %c0_i32 = arith.constant 0 : i32
    %c0_i32_0 = arith.constant 0 : i32
    return %arg0, %c0_i32 : i32, i32
  }
  func.func @transform_1(%arg0: i32, %arg1: i32) -> (i32, i32) {
    %c0_i32 = arith.constant 0 : i32
    %c0_i32_0 = arith.constant 0 : i32
    return %c0_i32, %arg1 : i32, i32
  }
  func.func @transform_2(%arg0: i32, %arg1: i32) -> (i32, i32) {
    %c0_i32 = arith.constant 0 : i32
    %c0_i32_0 = arith.constant 0 : i32
    return %c0_i32, %arg1 : i32, i32
  }
  func.func @transform_3(%arg0: i32, %arg1: i32) -> (i32, i32) {
    %c0_i32 = arith.constant 0 : i32
    return %arg0, %arg1 : i32, i32
  }
}

</mosaic_0001>

<bundles_post_ra>
// kernel: linear_forward.1
= control target key start
LH: loop header
LB: loop body
LE: loop exit
PB: predicated region body
PF: predicated region fallthrough
CT: control target
= control target key end

     0   :  { %v168_v3 = vmov 0.0|0.0   ;;  %vm169_vm0 = vmmov 0   ;;  %v170_v6 = vmov 0.0   ;;  %s222_s0 = inlined_call_operand.vmem [shape: f32[8,32], index: 0, kind: input, shape index: {}]   ;;  %s223_s1 = inlined_call_operand.vmem [shape: f32[32,128], index: 1, kind: input, shape index: {}]   ;;  %s224_s2 = inlined_call_operand.vmem [shape: f32[1,128], index: 2, kind: input, shape index: {}]   ;;  %s225_s3 = inlined_call_operand.hbm [shape: f32[8,128], index: 3, kind: output, shape index: {}]  }
   0x1   :  { %v16_v0 = vld [vmem:[%s223_s1] sm:$0xff]  ;;  %v17_v1 = vld [vmem:[%s223_s1 + $0x8] sm:$0xff]  ;;  %v18_v2 = vld [vmem:[%s223_s1 + $0x10] sm:$0xff]  ;;  %134 = vmatprep.subr.bf16.mxu0 %v168_v3  ;;  %131 = vmatprep.mubr.msk.f32.mxu0 %vm169_vm0, %v170_v6 }
   0x2   :  { %v135_v4 = vpack.c.bf16 %v17_v1, %v16_v0  ;;  %v19_v5 = vld [vmem:[%s223_s1 + $0x18] sm:$0xff] }
   0x3   :  { %8 = vsyncpa [#allocation3], 0  ;;  %v138_v7 = vpack.c.bf16 %v19_v5, %v18_v2  ;;  %v15_v8 = vld [vmem:[%s222_s0] sm:$0xff]  ;;  %vm27_vm1 = vcmask 261120   ;;  %s171_s24 = smov [#allocation2]  }
   0x4   :  { %136 = vmatpush3.bf16.msra.mxu0 %v135_v4  ;;  %v116_v9 = vld [vmem:[%s224_s2] ss:$0 sm:$0xff]  ;;  %s108_s1 = sshll.u32 %s171_s24, 4  ;;  %s109_s1 = int_to_ptr.vmem [resolvable:$true] %s108_s1 }
   0x5   :  { %137 = vmatprep.subr.bf16.mxu0 %v168_v3  ;;  %s144_s25 = scalar_lea.vmem %s109_s1, 128  ;;  %p149_p1 = scmp.lt.s32.totalorder %s109_s1, %s109_s1 }
   0x6   :  { %p145_p0 = scmp.ne.s32.totalorder %s109_s1, %s144_s25  ;;  %p150_p2 = scmp.lt.s32.totalorder %s144_s25, %s144_s25 }
   0x8   :  { %139 = vmatpush3.bf16.msra.mxu0 %v138_v7  ;;  %p151_p3 = por %p150_p2, %p149_p1 }
   0xa   :  { %p152_p4 = pnand %p151_p3, %p145_p0 }
   0xb   :  { %132 = vmatmul.mubr.msk.f32.vlgmr.msra.gmra.mrb[0].mxu0 %vm27_vm1, %v15_v8 }
  0xde   :  { %v97_v10 = vpop.f32.mrb[0].mxu0 }
  0xdf   :  { %v98_v11 = vadd.f32 %v116_v9, %v97_v10  ;;  %v133_v12 = vpop.f32.mrb[1].mxu0 }
  0xe1   :  { %101 = vst [vmem:[#allocation2] sm:$0xff] %v98_v11 }
  0xe2   :  { %155 = shalt.err (!%p152_p4)
}
  0xe3   :  { %s156_s27 = scalar_lea.hbm %s225_s3, 128 }
  0xe4   :  { %p157_p5 = scmp.ne.s32.totalorder %s225_s3, %s156_s27  ;;  %p160_p6 = scmp.lt.u32.totalorder %s156_s27, %s225_s3 }
  0xe6   :  { %p162_p7 = pnand %p160_p6, %p157_p5 }
  0xe8   :  { %165 = shalt.err (!%p162_p7)
}
  0xe9   :  { %111 = dma.vmem_to_hbm [thread:$0]  %s109_s1, 128, %s225_s3, [#allocation3]  }
  0xea   :  { %166 = dma.done.wait [#allocation3], 128  }
  0xeb   :  { %167 = vsyncadd [#allocation3], 4294967168 }
  0xec   :  { %115 = vsyncpa [#allocation3], 1 }

</bundles_post_ra>
